<compile_context>
chip_gen: v7x
topology: tpu7x:2x2x1
jax: 0.10.0
libtpu: 0.0.40
codegen_flags: <defaults>
</compile_context>

<pallas_src>
import functools

import jax
import jax.numpy as jnp
from jax.experimental import pallas as pl
from jax.experimental.pallas import tpu as pltpu


def _round_up(x, m):
    return ((x + m - 1) // m) * m


# ---------------------------------------------------------------------------
# Kernel 1: shared lin1 on the three feature matrices -> one (tile, 3H) slab.
# ---------------------------------------------------------------------------
def _lin1_kernel(un_ref, in_ref, out_ref, w_ref, b_ref, y_ref):
    w = w_ref[...]          # load once, reuse for all three matmuls (hold RHS)
    b = b_ref[...]
    y_un = jnp.dot(un_ref[...], w, preferred_element_type=jnp.float32) + b
    y_in = jnp.dot(in_ref[...], w, preferred_element_type=jnp.float32) + b
    y_out = jnp.dot(out_ref[...], w, preferred_element_type=jnp.float32) + b
    # single lane-dense (tile, 3H) store instead of three narrow (tile, H) stores
    y_ref[...] = jnp.concatenate([y_un, y_in, y_out], axis=-1).astype(y_ref.dtype)


# ---------------------------------------------------------------------------
# Kernel 2: per-direction adjacency aggregation of the Y slab + relu + lin2.
#   out[i] = relu(A_un[i,:]@Y[:, :H]) @ Wu + relu(A_in[i,:]@Y[:, H:2H]) @ Wi
#          + relu(A_out[i,:]@Y[:, 2H:]) @ Wo + b
# Grid = (row_tiles, k_tiles); k is the reduction axis (f32 accumulators in VMEM).
# ---------------------------------------------------------------------------
def _agg3_lin_kernel(hidden,
                     aun_ref, ain_ref, aout_ref, y_ref,
                     wu_ref, wi_ref, wo_ref, b_ref,
                     o_ref,
                     acc_un, acc_in, acc_out):
    k = pl.program_id(1)

    @pl.when(k == 0)
    def _init():
        acc_un[...] = jnp.zeros_like(acc_un)
        acc_in[...] = jnp.zeros_like(acc_in)
        acc_out[...] = jnp.zeros_like(acc_out)

    y = y_ref[...]                                   # (tile_k, 3H) bf16, one DMA stream
    acc_un[...] += jnp.dot(aun_ref[...], y[:, :hidden],
                           preferred_element_type=jnp.float32)
    acc_in[...] += jnp.dot(ain_ref[...], y[:, hidden:2 * hidden],
                           preferred_element_type=jnp.float32)
    acc_out[...] += jnp.dot(aout_ref[...], y[:, 2 * hidden:],
                            preferred_element_type=jnp.float32)

    @pl.when(k == pl.num_programs(1) - 1)
    def _finalize():
        h_un = jnp.maximum(acc_un[...], 0.0)
        h_in = jnp.maximum(acc_in[...], 0.0)
        h_out = jnp.maximum(acc_out[...], 0.0)
        # split-weight form of  relu(cat(...)) @ W + b   (no lane concat)
        y_out = (jnp.dot(h_un, wu_ref[...], preferred_element_type=jnp.float32)
                 + jnp.dot(h_in, wi_ref[...], preferred_element_type=jnp.float32)
                 + jnp.dot(h_out, wo_ref[...], preferred_element_type=jnp.float32)
                 + b_ref[...])
        o_ref[...] = y_out.astype(o_ref.dtype)


# ---------------------------------------------------------------------------
# Kernel 3: same structure but the three adjacencies share ONE (tile_k, H) input
# (the output of lin2), streamed once per k-tile.
# ---------------------------------------------------------------------------
def _agg1_lin_kernel(aun_ref, ain_ref, aout_ref, y_ref,
                     wu_ref, wi_ref, wo_ref, b_ref,
                     o_ref,
                     acc_un, acc_in, acc_out):
    k = pl.program_id(1)

    @pl.when(k == 0)
    def _init():
        acc_un[...] = jnp.zeros_like(acc_un)
        acc_in[...] = jnp.zeros_like(acc_in)
        acc_out[...] = jnp.zeros_like(acc_out)

    y = y_ref[...]
    acc_un[...] += jnp.dot(aun_ref[...], y, preferred_element_type=jnp.float32)
    acc_in[...] += jnp.dot(ain_ref[...], y, preferred_element_type=jnp.float32)
    acc_out[...] += jnp.dot(aout_ref[...], y, preferred_element_type=jnp.float32)

    @pl.when(k == pl.num_programs(1) - 1)
    def _finalize():
        h_un = jnp.maximum(acc_un[...], 0.0)
        h_in = jnp.maximum(acc_in[...], 0.0)
        h_out = jnp.maximum(acc_out[...], 0.0)
        y_out = (jnp.dot(h_un, wu_ref[...], preferred_element_type=jnp.float32)
                 + jnp.dot(h_in, wi_ref[...], preferred_element_type=jnp.float32)
                 + jnp.dot(h_out, wo_ref[...], preferred_element_type=jnp.float32)
                 + b_ref[...])
        o_ref[...] = y_out.astype(o_ref.dtype)


# ---------------------------------------------------------------------------
# Tiling heuristics
# ---------------------------------------------------------------------------
def _choose_tiles(n, tm):
    """Return (tile_m, tile_k, N_pad, n_row, n_k)."""
    n8 = _round_up(n, 8)
    tm = max(128, (int(tm) // 128) * 128)
    if n8 <= 2 * tm:
        # Whole adjacency row-block fits: no k-tiling; Y is effectively VMEM-resident.
        if n8 >= 256:
            # >=2 row tiles so both v7x TensorCores get work (near-zero padding).
            tile_m = _round_up((n8 + 1) // 2, 8)
            n_pad = 2 * tile_m
            n_row = 2
        else:
            tile_m, n_pad, n_row = n8, n8, 1
        return tile_m, n_pad, n_pad, n_row, 1
    # Large N: square 128-aligned tiles; pick the candidate minimizing padded traffic.
    best_tile, best_pad = tm, _round_up(n8, tm)
    for t in range(tm - 128, 511, -128):
        npad = _round_up(n8, t)
        if npad < best_pad:
            best_tile, best_pad = t, npad
    n_row = best_pad // best_tile
    return best_tile, best_tile, best_pad, n_row, n_row


def _agg_vmem_bytes(tile_m, tile_k, n_k, hidden, out_dim):
    """Rough VMEM footprint of an aggregation kernel (bf16 streams, f32 accs)."""
    adj = 3 * 2 * tile_m * tile_k * 2                 # 3 adjacency tiles, double-buffered
    yb = (2 if n_k > 1 else 1) * tile_k * 3 * hidden * 2
    outb = 2 * tile_m * max(hidden, out_dim) * 4
    acc = 3 * tile_m * hidden * 4
    wts = 2 * (3 * hidden * max(hidden, out_dim) + max(hidden, out_dim)) * 4
    return adj + yb + outb + acc + wts


# ---------------------------------------------------------------------------
# Wrapper
# ---------------------------------------------------------------------------
def two_dir_2layer_gcn(un_feature, in_feature, out_feature,
                       un_adj, in_adj, out_adj, params, *, tm=1024):
    """params: w1 (F,H), b1 (H,), w2 (3H,H), b2 (H,), wc (3H,D), bc (D,).

    Weights are stored TRANSPOSED as (in, out) so kernels do  x @ W + b  on the MXU
    (equivalent to PyTorch's x @ W.T + b).
    """
    N, F = un_feature.shape
    H = params["w1"].shape[1]
    D = params["wc"].shape[1]
    out_dtype = un_feature.dtype
    agg_dtype = jnp.bfloat16                 # adjacency / activation streaming dtype

    tile_m, tile_k, N_pad, n_row, n_k = _choose_tiles(N, tm)

    def pad_rows(x):
        return x if x.shape[0] == N_pad else jnp.pad(x, ((0, N_pad - x.shape[0]), (0, 0)))

    def pad_adj(a):
        p = N_pad - a.shape[0]
        a = a if p == 0 else jnp.pad(a, ((0, p), (0, p)))
        return a.astype(agg_dtype)           # bf16: halves the dominant HBM stream

    un_f, in_f, out_f = pad_rows(un_feature), pad_rows(in_feature), pad_rows(out_feature)
    a_un, a_in, a_out = pad_adj(un_adj), pad_adj(in_adj), pad_adj(out_adj)

    w1, b1 = params["w1"], params["b1"].reshape(1, H)
    w2, b2 = params["w2"], params["b2"].reshape(1, H)
    wc, bc = params["wc"], params["bc"].reshape(1, D)
    # split the "cat" weights into per-direction blocks (no concat in-kernel)
    w2_un, w2_in, w2_out = w2[:H], w2[H:2 * H], w2[2 * H:]
    wc_un, wc_in, wc_out = wc[:H], wc[H:2 * H], wc[2 * H:]

    # ---------------- kernel 1: lin1 on all three feature matrices ----------
    feat_spec = pl.BlockSpec((tile_m, F), lambda i: (i, 0))
    full1 = lambda shape: pl.BlockSpec(shape, lambda i: (0, 0))

    y1 = pl.pallas_call(
        _lin1_kernel,
        out_shape=jax.ShapeDtypeStruct((N_pad, 3 * H), agg_dtype),
        grid_spec=pltpu.PrefetchScalarGridSpec(
            num_scalar_prefetch=0,
            grid=(n_row,),
            in_specs=[feat_spec, feat_spec, feat_spec,
                      full1((F, H)), full1((1, H))],
            out_specs=pl.BlockSpec((tile_m, 3 * H), lambda i: (i, 0))),
        compiler_params=pltpu.CompilerParams(
            dimension_semantics=("parallel",)),
    )(un_f, in_f, out_f, w1, b1)

    # ---------------- kernels 2 & 3 share grid / adjacency specs ------------
    grid2 = (n_row, n_k)
    adj_spec = pl.BlockSpec((tile_m, tile_k), lambda i, k: (i, k))
    full2 = lambda shape: pl.BlockSpec(shape, lambda i, k: (0, 0))
    acc_scratch = [pltpu.VMEM((tile_m, H), jnp.float32)] * 3

    vmem_limit = int(min(48 << 20,
                         max(32 << 20,
                             _agg_vmem_bytes(tile_m, tile_k, n_k, H, D) * 1.25 + (4 << 20))))
    agg_params = pltpu.CompilerParams(
        dimension_semantics=("parallel", "arbitrary"),
        vmem_limit_bytes=vmem_limit)

    # layer 1: aggregate + relu + lin2
    x2 = pl.pallas_call(
        functools.partial(_agg3_lin_kernel, H),
        out_shape=jax.ShapeDtypeStruct((N_pad, H), agg_dtype),
        grid_spec=pltpu.PrefetchScalarGridSpec(
            num_scalar_prefetch=0,
            grid=grid2,
            in_specs=[adj_spec, adj_spec, adj_spec,
                      pl.BlockSpec((tile_k, 3 * H), lambda i, k: (k, 0)),
                      full2((H, H)), full2((H, H)), full2((H, H)), full2((1, H))],
            out_specs=pl.BlockSpec((tile_m, H), lambda i, k: (i, 0)),
            scratch_shapes=list(acc_scratch)),
        compiler_params=agg_params,
    )(a_un, a_in, a_out, y1, w2_un, w2_in, w2_out, b2)

    # layer 2: aggregate + relu + one_dim_conv
    out = pl.pallas_call(
        _agg1_lin_kernel,
        out_shape=jax.ShapeDtypeStruct((N_pad, D), jnp.float32),
        grid_spec=pltpu.PrefetchScalarGridSpec(
            num_scalar_prefetch=0,
            grid=grid2,
            in_specs=[adj_spec, adj_spec, adj_spec,
                      pl.BlockSpec((tile_k, H), lambda i, k: (k, 0)),
                      full2((H, D)), full2((H, D)), full2((H, D)), full2((1, D))],
            out_specs=pl.BlockSpec((tile_m, D), lambda i, k: (i, 0)),
            scratch_shapes=list(acc_scratch)),
        compiler_params=agg_params,
    )(a_un, a_in, a_out, x2, wc_un, wc_in, wc_out, bc)

    out = out.astype(out_dtype)
    return out if N_pad == N else out[:N]


# ---------------------------------------------------------------------------
# Parameters / reference
# ---------------------------------------------------------------------------
def init_params(key, feat_dim, hidden_dim, output_dim, dtype=jnp.float32):
    """Mimics nn.Linear init; weights stored transposed as (in, out)."""
    ks = jax.random.split(key, 6)

    def linear(kw, kb, fan_in, fan_out):
        bound = 1.0 / jnp.sqrt(fan_in)
        w = jax.random.uniform(kw, (fan_in, fan_out), dtype, -bound, bound)
        b = jax.random.uniform(kb, (fan_out,), dtype, -bound, bound)
        return w, b

    w1, b1 = linear(ks[0], ks[1], feat_dim, hidden_dim)
    w2, b2 = linear(ks[2], ks[3], 3 * hidden_dim, hidden_dim)
    wc, bc = linear(ks[4], ks[5], 3 * hidden_dim, output_dim)
    return dict(w1=w1, b1=b1, w2=w2, b2=b2, wc=wc, bc=bc)


def reference(un_f, in_f, out_f, a_un, a_in, a_out, p):
    lin = lambda x, w, b: x @ w + b
    x_un = lin(un_f, p["w1"], p["b1"])
    x_in = lin(in_f, p["w1"], p["b1"])
    x_out = lin(out_f, p["w1"], p["b1"])
    x = jnp.concatenate([a_un @ x_un, a_in @ x_in, a_out @ x_out], axis=-1)
    x = jnp.maximum(x, 0.0)                        # relu; dropout = identity (eval)
    x = lin(x, p["w2"], p["b2"])
    x = jnp.concatenate([a_un @ x, a_in @ x, a_out @ x], axis=-1)
    x = jnp.maximum(x, 0.0)
    return lin(x, p["wc"], p["bc"])


# ---------------------------------------------------------------------------
# Demo / correctness check
# ---------------------------------------------------------------------------
if __name__ == "__main__":
    feat_dim, hidden_dim, output_dim = 32, 16, 8

    def make_case(key, n):
        ks = jax.random.split(key, 7)
        feats = [jax.random.normal(ks[i], (n, feat_dim), jnp.float32)
                 for i in range(3)]
        # normalized-ish dense "adjacency" matrices
        adjs = [jax.random.uniform(ks[3 + i], (n, n), jnp.float32) / n
                for i in range(3)]
        params = init_params(ks[6], feat_dim, hidden_dim, output_dim)
        return feats, adjs, params

    def check(out, ref, name, tol=3e-2):
        # bf16 adjacency / activation streaming => loose relative tolerance
        err = float(jnp.max(jnp.abs(out - ref))
                    / jnp.maximum(jnp.max(jnp.abs(ref)), 1e-6))
        assert err < tol, f"{name}: relative error {err:.4f} >= {tol}"

    # Case 1: tiny ragged N -> single tile, no k tiling.
    f1, a1, p1 = make_case(jax.random.PRNGKey(0), 12)
    out1 = jax.block_until_ready(two_dir_2layer_gcn(*f1, *a1, p1))
    assert out1.shape == (12, output_dim)
    check(out1, reference(*f1, *a1, p1), "case1")

    # Case 2: medium N -> two row tiles (megacore split), no k tiling, resident Y.
    f2, a2, p2 = make_case(jax.random.PRNGKey(1), 260)
    out2 = jax.block_until_ready(two_dir_2layer_gcn(*f2, *a2, p2))
    assert out2.shape == (260, output_dim)
    check(out2, reference(*f2, *a2, p2), "case2")

    # Case 3: small tm forces the multi-k-tile accumulator path + ragged padding.
    f3, a3, p3 = make_case(jax.random.PRNGKey(2), 300)
    out3 = jax.block_until_ready(two_dir_2layer_gcn(*f3, *a3, p3, tm=128))
    assert out3.shape == (300, output_dim)
    check(out3, reference(*f3, *a3, p3), "case3")

    print("KERNEL_OK")
</pallas_src>

<mosaic_0001>
module attributes {stable_mosaic.version = 11 : i64} {
  func.func @_lin1_kernel(%arg0: i32, %arg1: memref<16x32xf32, #tpu.memory_space<vmem>>, %arg2: memref<16x32xf32, #tpu.memory_space<vmem>>, %arg3: memref<16x32xf32, #tpu.memory_space<vmem>>, %arg4: memref<32x16xf32, #tpu.memory_space<vmem>>, %arg5: memref<1x16xf32, #tpu.memory_space<vmem>>, %arg6: memref<16x48xbf16, #tpu.memory_space<vmem>>) attributes {dimension_semantics = [#tpu.dimension_semantics<parallel>], iteration_bounds = array<i64: 1>, scalar_prefetch = 0 : i64, scratch_operands = 0 : i64, tpu.core_type = #tpu.core_type<tc>, window_params = [{transform_indices = @transform_0, window_bounds = array<i64: 16, 32>}, {transform_indices = @transform_1, window_bounds = array<i64: 16, 32>}, {transform_indices = @transform_2, window_bounds = array<i64: 16, 32>}, {pipeline_mode = #tpu.pipeline_mode<synchronous>, transform_indices = @transform_3, window_bounds = array<i64: 32, 16>}, {pipeline_mode = #tpu.pipeline_mode<synchronous>, transform_indices = @transform_4, window_bounds = array<i64: 1, 16>}, {transform_indices = @transform_5, window_bounds = array<i64: 16, 48>}]} {
    %c0 = arith.constant 0 : index
    %c0_0 = arith.constant 0 : index
    %0 = vector.load %arg4[%c0, %c0_0] : memref<32x16xf32, #tpu.memory_space<vmem>>, vector<32x16xf32>
    %c0_1 = arith.constant 0 : index
    %c0_2 = arith.constant 0 : index
    %1 = vector.load %arg5[%c0_1, %c0_2] : memref<1x16xf32, #tpu.memory_space<vmem>>, vector<1x16xf32>
    %c0_3 = arith.constant 0 : index
    %c0_4 = arith.constant 0 : index
    %2 = vector.load %arg1[%c0_3, %c0_4] : memref<16x32xf32, #tpu.memory_space<vmem>>, vector<16x32xf32>
    %cst = arith.constant dense<0.000000e+00> : vector<16x16xf32>
    %3 = tpu.matmul %2, %0, %cst {dimension_numbers = #tpu.dot_dimension_numbers<[1], [0], [0], [1], [0, 0, 1, 1], [], []>} : vector<16x32xf32>, vector<32x16xf32>, vector<16x16xf32> -> vector<16x16xf32>
    %4 = vector.broadcast %1 : vector<1x16xf32> to vector<16x16xf32>
    %5 = arith.addf %3, %4 : vector<16x16xf32>
    %c0_5 = arith.constant 0 : index
    %c0_6 = arith.constant 0 : index
    %6 = vector.load %arg2[%c0_5, %c0_6] : memref<16x32xf32, #tpu.memory_space<vmem>>, vector<16x32xf32>
    %cst_7 = arith.constant dense<0.000000e+00> : vector<16x16xf32>
    %7 = tpu.matmul %6, %0, %cst_7 {dimension_numbers = #tpu.dot_dimension_numbers<[1], [0], [0], [1], [0, 0, 1, 1], [], []>} : vector<16x32xf32>, vector<32x16xf32>, vector<16x16xf32> -> vector<16x16xf32>
    %8 = vector.broadcast %1 : vector<1x16xf32> to vector<16x16xf32>
    %9 = arith.addf %7, %8 : vector<16x16xf32>
    %c0_8 = arith.constant 0 : index
    %c0_9 = arith.constant 0 : index
    %10 = vector.load %arg3[%c0_8, %c0_9] : memref<16x32xf32, #tpu.memory_space<vmem>>, vector<16x32xf32>
    %cst_10 = arith.constant dense<0.000000e+00> : vector<16x16xf32>
    %11 = tpu.matmul %10, %0, %cst_10 {dimension_numbers = #tpu.dot_dimension_numbers<[1], [0], [0], [1], [0, 0, 1, 1], [], []>} : vector<16x32xf32>, vector<32x16xf32>, vector<16x16xf32> -> vector<16x16xf32>
    %12 = vector.broadcast %1 : vector<1x16xf32> to vector<16x16xf32>
    %13 = arith.addf %11, %12 : vector<16x16xf32>
    %14 = tpu.concatenate %5, %9, %13 in 1 : vector<16x16xf32>, vector<16x16xf32>, vector<16x16xf32> -> vector<16x48xf32>
    %15 = arith.truncf %14 : vector<16x48xf32> to vector<16x48xbf16>
    %c0_11 = arith.constant 0 : index
    %c0_12 = arith.constant 0 : index
    %16 = vector.load %arg6[%c0_11, %c0_12] : memref<16x48xbf16, #tpu.memory_space<vmem>>, vector<16x48xbf16>
    tpu.vector_store %arg6[%c0_11, %c0_12], %15 {strides = array<i32>} : memref<16x48xbf16, #tpu.memory_space<vmem>>, vector<16x48xbf16>,
    return
  }
  func.func @transform_0(%arg0: i32) -> (i32, i32) {
    %c0_i32 = arith.constant 0 : i32
    %c0_i32_0 = arith.constant 0 : i32
    return %arg0, %c0_i32 : i32, i32
  }
  func.func @transform_1(%arg0: i32) -> (i32, i32) {
    %c0_i32 = arith.constant 0 : i32
    %c0_i32_0 = arith.constant 0 : i32
    return %arg0, %c0_i32 : i32, i32
  }
  func.func @transform_2(%arg0: i32) -> (i32, i32) {
    %c0_i32 = arith.constant 0 : i32
    %c0_i32_0 = arith.constant 0 : i32
    return %arg0, %c0_i32 : i32, i32
  }
  func.func @transform_3(%arg0: i32) -> (i32, i32) {
    %c0_i32 = arith.constant 0 : i32
    %c0_i32_0 = arith.constant 0 : i32
    %c0_i32_1 = arith.constant 0 : i32
    return %c0_i32, %c0_i32_0 : i32, i32
  }
  func.func @transform_4(%arg0: i32) -> (i32, i32) {
    %c0_i32 = arith.constant 0 : i32
    %c0_i32_0 = arith.constant 0 : i32
    %c0_i32_1 = arith.constant 0 : i32
    return %c0_i32, %c0_i32_0 : i32, i32
  }
  func.func @transform_5(%arg0: i32) -> (i32, i32) {
    %c0_i32 = arith.constant 0 : i32
    %c0_i32_0 = arith.constant 0 : i32
    return %arg0, %c0_i32 : i32, i32
  }
}

</mosaic_0001>

<bundles_post_ra>
// kernel: tpu_custom_call.1
= control target key start
LH: loop header
LB: loop body
LE: loop exit
PB: predicated region body
PF: predicated region fallthrough
CT: control target
= control target key end

     0   :  { %vm34_vm0 = vcmask 261120   ;;  %s543_s0 = inlined_call_operand.vmem [shape: f32[16,32], index: 0, kind: input, shape index: {}]   ;;  %s544_s1 = inlined_call_operand.vmem [shape: f32[16,32], index: 1, kind: input, shape index: {}]   ;;  %s545_s2 = inlined_call_operand.vmem [shape: f32[16,32], index: 2, kind: input, shape index: {}]   ;;  %s546_s3 = inlined_call_operand.vmem [shape: f32[32,16], index: 3, kind: input, shape index: {}]   ;;  %s547_s4 = inlined_call_operand.vmem [shape: f32[1,16], index: 4, kind: input, shape index: {}]   ;;  %s548_s5 = inlined_call_operand.hbm [shape: bf16[16,48], index: 5, kind: output, shape index: {}]  }
   0x1   :  { %v21_v0 = vld [vmem:[%s546_s3] sm:$0xff]  ;;  %v22_v1 = vld [vmem:[%s546_s3 + $0x8] sm:$0xff]  ;;  %v23_v2 = vld [vmem:[%s546_s3 + $0x10] sm:$0xff] }
   0x2   :  { %v392_v3 = vpack.c.bf16 %v22_v1, %v21_v0  ;;  %v24_v4 = vld [vmem:[%s546_s3 + $0x18] sm:$0xff]  ;;  %v26_v5 = vld [vmem:[%s543_s0] sm:$0xff] }
   0x3   :  { %v116_v6 = vld [vmem:[%s544_s1] sm:$0xff]  ;;  %v396_v7 = vpack.c.bf16 %v24_v4, %v23_v2  ;;  %367 = vmatprep.mubr.msk.f32.mxu0 %vm34_vm0, %v26_v5 }
   0x4   :  { %378 = vmatprep.mubr.msk.f32.mxu1 %vm34_vm0, %v116_v6  ;;  %393 = vmatprep.subr.bf16.mxu0 %v392_v3 }
   0x5   :  { %401 = vmatprep.subr.bf16.mxu1 %v392_v3 }
   0x6   :  { %10 = vsyncpa [#allocation3], 0  ;;  %395 = vmatpush3.bf16.msra.mxu0 %v392_v3  ;;  %403 = vmatpush3.bf16.msra.mxu1 %v392_v3  ;;  %v27_v8 = vld [vmem:[%s543_s0 + $0x8] sm:$0xff]  ;;  %v199_v10 = vld [vmem:[%s545_s2] sm:$0xff]  ;;  %s455_s12 = smov 16   ;;  %vm298_vm1 = vcmask 130048  }
   0x7   :  { %397 = vmatprep.subr.bf16.mxu0 %v396_v7  ;;  %405 = vmatprep.subr.bf16.mxu1 %v396_v7  ;;  %v117_v9 = vld [vmem:[%s544_s1 + $0x8] sm:$0xff]  ;;  %v330_v12 = vld [vmem:[%s547_s4] ss:$0 sm:$0xff]  ;;  %s457_s4 = smov [#allocation2]   ;;  %vm311_vm2 = vcmask 388096  }
   0x8   :  { %v200_v11 = vld [vmem:[%s545_s2 + $0x8] sm:$0xff]  ;;  %s456_s2 = smov 32   ;;  %s319_s13 = sshll.u32 %s457_s4, 4  ;;  %s320_s13 = int_to_ptr.vmem [resolvable:$true] %s319_s13 }
   0x9   :  { %s431_s14 = scalar_lea.vmem %s320_s13, 128  ;;  %p436_p1 = scmp.lt.s32.totalorder %s320_s13, %s320_s13 }
   0xa   :  { %399 = vmatpush3.bf16.msra.mxu0 %v396_v7  ;;  %407 = vmatpush3.bf16.msra.mxu1 %v396_v7  ;;  %p432_p0 = scmp.ne.s32.totalorder %s320_s13, %s431_s14  ;;  %p437_p2 = scmp.lt.s32.totalorder %s431_s14, %s431_s14 }
   0xb   :  { %409 = vmatprep.subr.bf16.mxu0 %v392_v3 }
   0xc   :  { %p438_p3 = por %p437_p2, %p436_p1 }
   0xd   :  { %368 = vmatmul.mubr.msk.f32.vlgmr.msra.gmra.mrb[0].mxu0 %vm34_vm0, %v27_v8  ;;  %379 = vmatmul.mubr.msk.f32.vlgmr.msra.gmra.mrb[0].mxu1 %vm34_vm0, %v117_v9 }
   0xe   :  { %411 = vmatpush3.bf16.msra.mxu0 %v392_v3  ;;  %389 = vmatprep.mubr.msk.f32.mxu0 %vm34_vm0, %v199_v10  ;;  %p439_p4 = pnand %p438_p3, %p432_p0 }
   0xf   :  { %413 = vmatprep.subr.bf16.mxu0 %v396_v7 }
  0x12   :  { %415 = vmatpush3.bf16.msra.mxu0 %v396_v7 }
  0x15   :  { %390 = vmatmul.mubr.msk.f32.vlgmr.msra.gmra.mrb[2].mxu0 %vm34_vm0, %v200_v11 }
  0xe0   :  { %v369_v13 = vpop.f32.mrb[0].mxu0  ;;  %v380_v14 = vpop.f32.mrb[0].mxu1 }
  0xe1   :  { %v113_v15 = vadd.f32 %v369_v13, %v330_v12  ;;  %v196_v16 = vadd.f32 %v380_v14, %v330_v12  ;;  %v107_v17 = vpop.f32.mrb[1].mxu0  ;;  %v190_v18 = vpop.f32.mrb[1].mxu1 }
  0xe2   :  { %v108_v19 = vadd.f32 %v330_v12, %v107_v17  ;;  %v191_v20 = vadd.f32 %v330_v12, %v190_v18 }
  0xe4   :  { %v421_v21 = vpack.i.bf16 %v196_v16, %v191_v20 }
  0xe6   :  { %422 = vrot.lane.b32.xlu0 %v421_v21, %s455_s12 }
  0xe8   :  { %v391_v22 = vpop.f32.mrb[2].mxu0 }
  0xe9   :  { %v279_v23 = vadd.f32 %v391_v22, %v330_v12  ;;  %v273_v24 = vpop.f32.mrb[3].mxu0 }
  0xea   :  { %v274_v25 = vadd.f32 %v330_v12, %v273_v24 }
  0xec   :  { %v426_v26 = vpack.i.bf16 %v279_v23, %v274_v25 }
  0xee   :  { %427 = vrot.lane.b32.xlu0 %v426_v26, %s456_s2 }
 0x158   :  { %v423_v27 = vpop.permute.xlu0 %422 }
 0x159   :  { %v425_v28 = vunpack.i.h.bf16 %v423_v27  ;;  %v424_v29 = vunpack.i.l.bf16 %v423_v27 }
 0x15b   :  { %v299_v33 = vsel %vm298_vm1, %v108_v19, %v424_v29  ;;  %v300_v34 = vsel %vm298_vm1, %v113_v15, %v425_v28 }
 0x160   :  { %v428_v30 = vpop.permute.xlu0 %427 }
 0x161   :  { %v430_v31 = vunpack.i.h.bf16 %v428_v30  ;;  %v429_v32 = vunpack.i.l.bf16 %v428_v30 }
 0x163   :  { %v302_v35 = vsel %vm34_vm0, %v300_v34, %v430_v31  ;;  %v301_v36 = vsel %vm34_vm0, %v299_v33, %v429_v32 }
 0x164   :  { %v340_v37 = vpack.c.bf16 %v302_v35, %v302_v35  ;;  %v339_v38 = vpack.c.bf16 %v301_v36, %v301_v36 }
 0x166   :  { %313 = vst.msk [vmem:[#allocation2 + $0x4] sm:$0xf] %vm311_vm2, %v340_v37  ;;  %312 = vst.msk [vmem:[#allocation2] sm:$0xf] %vm311_vm2, %v339_v38 }
 0x167   :  { %442 = shalt.err (!%p439_p4)
}
 0x168   :  { %s443_s17 = scalar_lea.hbm %s548_s5, 128 }
 0x169   :  { %p444_p5 = scmp.ne.s32.totalorder %s548_s5, %s443_s17  ;;  %p447_p6 = scmp.lt.u32.totalorder %s443_s17, %s548_s5 }
 0x16b   :  { %p449_p7 = pnand %p447_p6, %p444_p5 }
 0x16d   :  { %452 = shalt.err (!%p449_p7)
}
 0x16e   :  { %s458_s22 = smov 64   ;;  %s459_s23 = smov 4  }
 0x16f   :  { %325 = dma.vmem_to_hbm [thread:$0]  %s320_s13, 128, %s548_s5, [#allocation3], %s458_s22, %s458_s22, %s459_s23  }
 0x170   :  { %453 = dma.done.wait [#allocation3], 128  }
 0x171   :  { %454 = vsyncadd [#allocation3], 4294967168 }
 0x172   :  { %329 = vsyncpa [#allocation3], 1 }

</bundles_post_ra>
